<compile_context>
chip_gen: v7x
topology: tpu7x:2x2x1
jax: 0.10.0
libtpu: 0.0.40
codegen_flags: <defaults>
</compile_context>

<pallas_src>
import functools

import jax
import jax.numpy as jnp
from jax.experimental import pallas as pl
from jax.experimental.pallas import tpu as pltpu


# ---------------------------------------------------------------------------
# generation-aware budgets
# ---------------------------------------------------------------------------

def _query_vmem_capacity():
    try:
        info = pltpu.get_tpu_info()
        cap = int(getattr(info, "vmem_capacity_bytes", 0))
        if cap > 0:
            return cap, True
    except Exception:
        pass
    # Conservative default (v7x-sized per-core VMEM) if the query is unavailable.
    return 64 * 1024 * 1024, False


_VMEM_CAP, _VMEM_CAP_KNOWN = _query_vmem_capacity()
# Leave headroom for Mosaic-internal scratch below the physical capacity.
_VMEM_LIMIT_CAP = max(32 << 20, _VMEM_CAP - (8 << 20))
# 64 MiB-per-core VMEM is the v7x signature (2 TensorCores per chip).
_ASSUME_MULTI_TC = _VMEM_CAP_KNOWN and _VMEM_CAP <= (64 << 20)
# Spatial tile target for the two-pass path (pass footprints are ~2-4x this).
_HW_TILE_BYTES = (8 << 20) if _VMEM_LIMIT_CAP >= (48 << 20) else (4 << 20)


def _vmem_limit(needed_bytes):
    return int(min(_VMEM_LIMIT_CAP, max(16 << 20, needed_bytes)))


def _use_mxu_pool(x_dtype, c):
    # MXU reduce avoids materializing an f32 copy of a sub-32-bit tile.  The
    # (T, 1) ones column is lane-padded to 128 in VMEM, so only use it when the
    # channel count makes that overhead small relative to the tile itself.
    return jnp.dtype(x_dtype).itemsize < 4 and c >= 128


def _fused_vmem_need(c, hw, x_dtype, weight_bytes):
    itemsize = jnp.dtype(x_dtype).itemsize
    slab = c * hw * itemsize
    if itemsize >= 4:
        pool_tmp = 0                      # f32 input: the reduce needs no copy
    elif _use_mxu_pool(x_dtype, c):
        pool_tmp = hw * 128 * itemsize    # lane-padded resident ones column
    else:
        pool_tmp = c * hw * 4             # f32 copy of the slab for the reduce
    # 4*slab = double-buffered input + output blocks; weights double-buffered.
    return 4 * slab + pool_tmp + 2 * weight_bytes + (2 << 20)


def _pick_hw_tile(hw, c, itemsize, max_block_bytes):
    """Pick a lane-aligned spatial tile.

    Returns (T, num_tiles).  T is either the full HW (single tile) or a
    multiple of 128; num_tiles = cdiv(hw, T) and the last tile may be ragged
    (handled by masking in the pool and clipped stores in the scale pass).
    Never falls back to a whole-slab block.
    """
    cap_elems = max(128, (max_block_bytes // max(1, c * itemsize)) // 128 * 128)
    if hw <= cap_elems:
        return hw, 1
    best_exact = None
    t = 128
    while t <= cap_elems:
        if hw % t == 0:
            best_exact = t
        t += 128
    if best_exact is not None and best_exact * 4 >= cap_elems:
        tile = best_exact                 # exact divisor reasonably close to cap
    else:
        tile = cap_elems                  # ragged last tile (waste < one tile)
    return tile, pl.cdiv(hw, tile)


# ---------------------------------------------------------------------------
# shared in-kernel excite FC (column orientation -> no transposes)
# ---------------------------------------------------------------------------

def _excite_cols(pooled, w1_ref, b1_ref, w2_ref, b2_ref):
    """pooled: (C, 1) f32 -> sigmoid scale (C, 1) f32."""
    h = jnp.maximum(
        jnp.dot(w1_ref[...], pooled, preferred_element_type=jnp.float32)
        + b1_ref[...], 0.0)                                        # (Cr, 1)
    return jax.nn.sigmoid(
        jnp.dot(w2_ref[...], h, preferred_element_type=jnp.float32)
        + b2_ref[...])                                             # (C, 1)


# ---------------------------------------------------------------------------
# fused path: one batch element per grid step, whole spatial extent resident
# ---------------------------------------------------------------------------

def _cse_fused_kernel(x_ref, *rest, inv_hw, use_mxu_pool):
    if use_mxu_pool:
        ones_ref, w1_ref, b1_ref, w2_ref, b2_ref, o_ref = rest
    else:
        w1_ref, b1_ref, w2_ref, b2_ref, o_ref = rest

    xv = x_ref[0]                                                  # (C, HW)

    if use_mxu_pool:
        # Sub-32-bit inputs: MXU reduce, f32 accumulation, no f32 tile copy.
        pooled = jnp.dot(xv, ones_ref[...],
                         preferred_element_type=jnp.float32) * inv_hw
    else:
        # f32 inputs: exact lane reduction (no cast needed, full precision).
        x32 = xv if xv.dtype == jnp.float32 else xv.astype(jnp.float32)
        pooled = jnp.sum(x32, axis=-1, keepdims=True) * inv_hw     # (C, 1)

    s = _excite_cols(pooled, w1_ref, b1_ref, w2_ref, b2_ref)       # (C, 1)
    o_ref[0] = xv * s.astype(xv.dtype)


def _cse_fused(x_flat, w1, b1, w2, b2):
    N, C, HW = x_flat.shape
    Cr = w1.shape[0]
    use_mxu = _use_mxu_pool(x_flat.dtype, C)

    b1c = b1.reshape(Cr, 1).astype(jnp.float32)
    b2c = b2.reshape(C, 1).astype(jnp.float32)

    weight_bytes = (w1.size + w2.size) * jnp.dtype(w1.dtype).itemsize
    vmem_limit = _vmem_limit(_fused_vmem_need(C, HW, x_flat.dtype, weight_bytes))

    kernel = functools.partial(_cse_fused_kernel, inv_hw=1.0 / HW,
                               use_mxu_pool=use_mxu)

    in_specs = [pl.BlockSpec((1, C, HW), lambda n: (n, 0, 0))]
    args = [x_flat]
    if use_mxu:
        in_specs.append(pl.BlockSpec((HW, 1), lambda n: (0, 0)))
        args.append(jnp.ones((HW, 1), x_flat.dtype))
    in_specs += [
        pl.BlockSpec((Cr, C), lambda n: (0, 0)),
        pl.BlockSpec((Cr, 1), lambda n: (0, 0)),
        pl.BlockSpec((C, Cr), lambda n: (0, 0)),
        pl.BlockSpec((C, 1), lambda n: (0, 0)),
    ]
    args += [w1, b1c, w2, b2c]

    return pl.pallas_call(
        kernel,
        out_shape=jax.ShapeDtypeStruct((N, C, HW), x_flat.dtype),
        grid_spec=pltpu.PrefetchScalarGridSpec(
            num_scalar_prefetch=0,
            grid=(N,),
            in_specs=in_specs,
            out_specs=pl.BlockSpec((1, C, HW), lambda n: (n, 0, 0)),
        ),
        compiler_params=pltpu.CompilerParams(
            dimension_semantics=("parallel",),
            vmem_limit_bytes=vmem_limit),
    )(*args)


# ---------------------------------------------------------------------------
# two-pass path: tiled pool (+ excite FC on the last tile) -> tiled scale
# ---------------------------------------------------------------------------

def _pool_excite_kernel(x_ref, *rest, inv_hw, hw, tile, use_mxu_pool):
    if use_mxu_pool:
        ones_ref, w1_ref, b1_ref, w2_ref, b2_ref, s_ref, acc_ref = rest
    else:
        w1_ref, b1_ref, w2_ref, b2_ref, s_ref, acc_ref = rest

    t = pl.program_id(1)

    @pl.when(t == 0)
    def _():
        acc_ref[...] = jnp.zeros_like(acc_ref)

    xv = x_ref[0]                                                  # (C, T)
    ragged = (hw % tile) != 0                                      # static
    if use_mxu_pool:
        ones = ones_ref[...]                                       # (T, 1)
        if ragged:
            lane = jax.lax.broadcasted_iota(jnp.int32, (tile, 1), 0)
            ones = jnp.where(lane + t * tile < hw, ones, jnp.zeros_like(ones))
        part = jnp.dot(xv, ones, preferred_element_type=jnp.float32)
    else:
        x32 = xv if xv.dtype == jnp.float32 else xv.astype(jnp.float32)
        if ragged:
            lane = jax.lax.broadcasted_iota(jnp.int32, (1, tile), 1)
            x32 = jnp.where(lane + t * tile < hw, x32, 0.0)
        part = jnp.sum(x32, axis=-1, keepdims=True)                # (C, 1)
    acc_ref[...] += part

    # The microscopic excite FC runs once per batch element, on the last tile.
    @pl.when(t == pl.num_programs(1) - 1)
    def _():
        s = _excite_cols(acc_ref[...] * inv_hw, w1_ref, b1_ref, w2_ref, b2_ref)
        s_ref[0] = s.astype(s_ref.dtype)


def _scale_kernel(x_ref, s_ref, o_ref):
    # Pure lane-dense broadcast multiply in the input dtype.
    o_ref[0] = x_ref[0] * s_ref[0]                                 # (C, T)*(C, 1)


def _cse_two_pass(x_flat, w1, b1, w2, b2, *, hw_tile_bytes=None):
    N, C, HW = x_flat.shape
    Cr = w1.shape[0]
    itemsize = jnp.dtype(x_flat.dtype).itemsize
    use_mxu = _use_mxu_pool(x_flat.dtype, C)

    tile_bytes = _HW_TILE_BYTES if hw_tile_bytes is None else hw_tile_bytes
    # TODO(synk): for extreme channel counts with tiny HW, tiling over C would
    # be needed as well; typical SE shapes are covered by HW tiling.
    T, n_t = _pick_hw_tile(HW, C, itemsize, tile_bytes)

    b1c = b1.reshape(Cr, 1).astype(jnp.float32)
    b2c = b2.reshape(C, 1).astype(jnp.float32)
    weight_bytes = (w1.size + w2.size) * jnp.dtype(w1.dtype).itemsize

    tile_slab = C * T * itemsize
    ones_bytes = T * 128 * itemsize if use_mxu else 0

    # ---- pass 1: pooled sums, excite FC folded into the last spatial step ---
    pool_kernel = functools.partial(_pool_excite_kernel, inv_hw=1.0 / HW,
                                    hw=HW, tile=T, use_mxu_pool=use_mxu)
    in_specs = [pl.BlockSpec((1, C, T), lambda n, t: (n, 0, t))]
    args = [x_flat]
    if use_mxu:
        # ones column passed as a resident input (DMA'd once) -- never
        # re-materialized per grid step.
        in_specs.append(pl.BlockSpec((T, 1), lambda n, t: (0, 0)))
        args.append(jnp.ones((T, 1), x_flat.dtype))
    in_specs += [
        pl.BlockSpec((Cr, C), lambda n, t: (0, 0)),
        pl.BlockSpec((Cr, 1), lambda n, t: (0, 0)),
        pl.BlockSpec((C, Cr), lambda n, t: (0, 0)),
        pl.BlockSpec((C, 1), lambda n, t: (0, 0)),
    ]
    args += [w1, b1c, w2, b2c]

    pool_vmem = _vmem_limit(2 * tile_slab + ones_bytes + 2 * weight_bytes
                            + 4 * C * 128 * max(itemsize, 4) + (2 << 20))
    s = pl.pallas_call(
        pool_kernel,
        out_shape=jax.ShapeDtypeStruct((N, C, 1), x_flat.dtype),
        grid_spec=pltpu.PrefetchScalarGridSpec(
            num_scalar_prefetch=0,
            grid=(N, n_t),
            in_specs=in_specs,
            out_specs=pl.BlockSpec((1, C, 1), lambda n, t: (n, 0, 0)),
            scratch_shapes=[pltpu.VMEM((C, 1), jnp.float32)],
        ),
        compiler_params=pltpu.CompilerParams(
            dimension_semantics=("parallel", "arbitrary"),
            vmem_limit_bytes=pool_vmem),
    )(*args)

    # ---- pass 2: tiled broadcast-scale (batch x spatial both parallel) ------
    scale_vmem = _vmem_limit(4 * tile_slab + 4 * C * 128 * itemsize + (2 << 20))
    out = pl.pallas_call(
        _scale_kernel,
        out_shape=jax.ShapeDtypeStruct((N, C, HW), x_flat.dtype),
        grid_spec=pltpu.PrefetchScalarGridSpec(
            num_scalar_prefetch=0,
            grid=(N, n_t),
            in_specs=[
                pl.BlockSpec((1, C, T), lambda n, t: (n, 0, t)),
                pl.BlockSpec((1, C, 1), lambda n, t: (n, 0, 0)),
            ],
            out_specs=pl.BlockSpec((1, C, T), lambda n, t: (n, 0, t)),
        ),
        compiler_params=pltpu.CompilerParams(
            dimension_semantics=("parallel", "parallel"),
            vmem_limit_bytes=scale_vmem),
    )(x_flat, s)
    return out


# ---------------------------------------------------------------------------
# public wrapper
# ---------------------------------------------------------------------------

def cse_forward(x, w1, b1, w2, b2, *, two_pass=None, hw_tile_bytes=None):
    """x: (N, C, H, W); w1: (Cr, C); b1: (Cr,); w2: (C, Cr); b2: (C,)."""
    N, C, H, W = x.shape
    HW = H * W
    x_flat = x.reshape(N, C, HW)

    if two_pass is None:
        weight_bytes = (w1.size + w2.size) * jnp.dtype(w1.dtype).itemsize
        two_pass = _fused_vmem_need(C, HW, x.dtype, weight_bytes) > _VMEM_LIMIT_CAP
        # v7x: 2 TensorCores per chip.  A fused grid of (N,) with N == 1 leaves
        # one core idle; the fully parallel 2-D two-pass grid wins there.
        if not two_pass and N == 1 and _ASSUME_MULTI_TC and HW >= 2 * 128:
            two_pass = True

    if two_pass:
        out = _cse_two_pass(x_flat, w1, b1, w2, b2, hw_tile_bytes=hw_tile_bytes)
    else:
        out = _cse_fused(x_flat, w1, b1, w2, b2)
    return out.reshape(N, C, H, W)


def cse_reference(x, w1, b1, w2, b2):
    # Pure-JAX reference mirroring the PyTorch forward.
    pooled = x.reshape(*x.shape[:-2], -1).mean(-1)          # (N, C)
    h = jax.nn.relu(pooled @ w1.T + b1)                     # (N, Cr)
    s = jax.nn.sigmoid(h @ w2.T + b2)                       # (N, C)
    return x * s[:, :, None, None]


if __name__ == "__main__":
    # Small shapes consistent with the module: batch=2, channels=4, spatial=16, r=2.
    N, C, H, W = 2, 4, 16, 16
    r = 2
    Cr = C // r

    key = jax.random.PRNGKey(0)
    kx, k1, k2, k3, k4, kx2 = jax.random.split(key, 6)

    x = jax.random.normal(kx, (N, C, H, W), dtype=jnp.float32)

    # Deterministic init mimicking nn.Linear default: U(-1/sqrt(fan_in), ...)
    bound1 = 1.0 / jnp.sqrt(C)
    w1 = jax.random.uniform(k1, (Cr, C), jnp.float32, -bound1, bound1)
    b1 = jax.random.uniform(k2, (Cr,), jnp.float32, -bound1, bound1)
    bound2 = 1.0 / jnp.sqrt(Cr)
    w2 = jax.random.uniform(k3, (C, Cr), jnp.float32, -bound2, bound2)
    b2 = jax.random.uniform(k4, (C,), jnp.float32, -bound2, bound2)

    ref = cse_reference(x, w1, b1, w2, b2)

    # Path 1: fused (pool + FC + scale in one kernel per batch element).
    out_fused = jax.block_until_ready(cse_forward(x, w1, b1, w2, b2, two_pass=False))
    # Path 2: two-pass, single spatial tile.
    out_tiled1 = jax.block_until_ready(cse_forward(x, w1, b1, w2, b2, two_pass=True))
    # Path 3: two-pass with a forced 128-lane tile (2 tiles) to exercise the
    # accumulator + the pl.when-gated excite on the last tile.
    out_tiled2 = jax.block_until_ready(
        cse_forward(x, w1, b1, w2, b2, two_pass=True,
                    hw_tile_bytes=128 * C * x.dtype.itemsize))
    # Path 4: automatic path selection (exercises the generation-aware budget).
    out_auto = jax.block_until_ready(cse_forward(x, w1, b1, w2, b2))

    assert out_fused.shape == ref.shape == (N, C, H, W)
    assert jnp.allclose(out_fused, ref, atol=1e-5, rtol=1e-5), "fused path mismatch"
    assert jnp.allclose(out_tiled1, ref, atol=1e-5, rtol=1e-5), "two-pass mismatch"
    assert jnp.allclose(out_tiled2, ref, atol=1e-5, rtol=1e-5), "tiled two-pass mismatch"
    assert jnp.allclose(out_auto, ref, atol=1e-5, rtol=1e-5), "auto path mismatch"

    # Ragged spatial extent (18*18 = 324, not a multiple of 128) with forced
    # 128-lane tiles: exercises the masked pooling tail + clipped boundary
    # stores in the scale pass.
    xr = jax.random.normal(kx2, (N, C, 18, 18), dtype=jnp.float32)
    ref_r = cse_reference(xr, w1, b1, w2, b2)
    out_r = jax.block_until_ready(
        cse_forward(xr, w1, b1, w2, b2, two_pass=True,
                    hw_tile_bytes=128 * C * xr.dtype.itemsize))
    assert jnp.allclose(out_r, ref_r, atol=1e-5, rtol=1e-5), "ragged two-pass mismatch"

    print("KERNEL_OK")
</pallas_src>

<mosaic_0001>
module attributes {stable_mosaic.version = 11 : i64} {
  func.func @_cse_fused_kernel(%arg0: i32, %arg1: memref<1x4x256xf32, #tpu.memory_space<vmem>>, %arg2: memref<2x4xf32, #tpu.memory_space<vmem>>, %arg3: memref<2x1xf32, #tpu.memory_space<vmem>>, %arg4: memref<4x2xf32, #tpu.memory_space<vmem>>, %arg5: memref<4x1xf32, #tpu.memory_space<vmem>>, %arg6: memref<1x4x256xf32, #tpu.memory_space<vmem>>) attributes {dimension_semantics = [#tpu.dimension_semantics<parallel>], iteration_bounds = array<i64: 2>, scalar_prefetch = 0 : i64, scratch_operands = 0 : i64, tpu.core_type = #tpu.core_type<tc>, window_params = [{transform_indices = @transform_0, window_bounds = array<i64: 1, 4, 256>}, {pipeline_mode = #tpu.pipeline_mode<synchronous>, transform_indices = @transform_1, window_bounds = array<i64: 2, 4>}, {pipeline_mode = #tpu.pipeline_mode<synchronous>, transform_indices = @transform_2, window_bounds = array<i64: 2, 1>}, {pipeline_mode = #tpu.pipeline_mode<synchronous>, transform_indices = @transform_3, window_bounds = array<i64: 4, 2>}, {pipeline_mode = #tpu.pipeline_mode<synchronous>, transform_indices = @transform_4, window_bounds = array<i64: 4, 1>}, {transform_indices = @transform_5, window_bounds = array<i64: 1, 4, 256>}]} {
    %c0 = arith.constant 0 : index
    %c0_0 = arith.constant 0 : index
    %c0_1 = arith.constant 0 : index
    %0 = vector.load %arg1[%c0, %c0_0, %c0_1] : memref<1x4x256xf32, #tpu.memory_space<vmem>>, vector<1x4x256xf32>
    %1 = vector.shape_cast %0 : vector<1x4x256xf32> to vector<4x256xf32>
    %cst = arith.constant dense<0.000000e+00> : vector<4xf32>
    %2 = vector.multi_reduction <add>, %1, %cst [1] : vector<4x256xf32> to vector<4xf32>
    %3 = vector.shape_cast %2 : vector<4xf32> to vector<4x1xf32>
    %cst_2 = arith.constant 3.906250e-03 : f32
    %4 = vector.broadcast %cst_2 : f32 to vector<4x1xf32>
    %5 = arith.mulf %3, %4 : vector<4x1xf32>
    %c0_3 = arith.constant 0 : index
    %c0_4 = arith.constant 0 : index
    %6 = vector.load %arg2[%c0_3, %c0_4] : memref<2x4xf32, #tpu.memory_space<vmem>>, vector<2x4xf32>
    %cst_5 = arith.constant dense<0.000000e+00> : vector<2x1xf32>
    %7 = tpu.matmul %6, %5, %cst_5 {dimension_numbers = #tpu.dot_dimension_numbers<[1], [0], [0], [1], [0, 0, 1, 1], [], []>} : vector<2x4xf32>, vector<4x1xf32>, vector<2x1xf32> -> vector<2x1xf32>
    %c0_6 = arith.constant 0 : index
    %c0_7 = arith.constant 0 : index
    %8 = vector.load %arg3[%c0_6, %c0_7] : memref<2x1xf32, #tpu.memory_space<vmem>>, vector<2x1xf32>
    %9 = arith.addf %7, %8 : vector<2x1xf32>
    %cst_8 = arith.constant 0.000000e+00 : f32
    %10 = vector.broadcast %cst_8 : f32 to vector<2x1xf32>
    %11 = arith.maximumf %9, %10 : vector<2x1xf32>
    %c0_9 = arith.constant 0 : index
    %c0_10 = arith.constant 0 : index
    %12 = vector.load %arg4[%c0_9, %c0_10] : memref<4x2xf32, #tpu.memory_space<vmem>>, vector<4x2xf32>
    %cst_11 = arith.constant dense<0.000000e+00> : vector<4x1xf32>
    %13 = tpu.matmul %12, %11, %cst_11 {dimension_numbers = #tpu.dot_dimension_numbers<[1], [0], [0], [1], [0, 0, 1, 1], [], []>} : vector<4x2xf32>, vector<2x1xf32>, vector<4x1xf32> -> vector<4x1xf32>
    %c0_12 = arith.constant 0 : index
    %c0_13 = arith.constant 0 : index
    %14 = vector.load %arg5[%c0_12, %c0_13] : memref<4x1xf32, #tpu.memory_space<vmem>>, vector<4x1xf32>
    %15 = arith.addf %13, %14 : vector<4x1xf32>
    %16 = arith.negf %15 : vector<4x1xf32>
    %17 = math.exp %16 : vector<4x1xf32>
    %cst_14 = arith.constant 1.000000e+00 : f32
    %18 = vector.broadcast %cst_14 : f32 to vector<4x1xf32>
    %19 = arith.addf %18, %17 : vector<4x1xf32>
    %20 = arith.divf %18, %19 : vector<4x1xf32>
    %21 = vector.broadcast %20 : vector<4x1xf32> to vector<4x256xf32>
    %22 = arith.mulf %1, %21 : vector<4x256xf32>
    %c0_15 = arith.constant 0 : index
    %c0_16 = arith.constant 0 : index
    %c0_17 = arith.constant 0 : index
    %23 = vector.load %arg6[%c0_15, %c0_16, %c0_17] : memref<1x4x256xf32, #tpu.memory_space<vmem>>, vector<1x4x256xf32>
    %24 = vector.shape_cast %23 : vector<1x4x256xf32> to vector<4x256xf32>
    %25 = vector.shape_cast %22 : vector<4x256xf32> to vector<1x4x256xf32>
    tpu.vector_store %arg6[%c0_15, %c0_16, %c0_17], %25 {strides = array<i32>} : memref<1x4x256xf32, #tpu.memory_space<vmem>>, vector<1x4x256xf32>,
    return
  }
  func.func @transform_0(%arg0: i32) -> (i32, i32, i32) {
    %c0_i32 = arith.constant 0 : i32
    %c0_i32_0 = arith.constant 0 : i32
    %c0_i32_1 = arith.constant 0 : i32
    return %arg0, %c0_i32, %c0_i32_0 : i32, i32, i32
  }
  func.func @transform_1(%arg0: i32) -> (i32, i32) {
    %c0_i32 = arith.constant 0 : i32
    %c0_i32_0 = arith.constant 0 : i32
    %c0_i32_1 = arith.constant 0 : i32
    return %c0_i32, %c0_i32_0 : i32, i32
  }
  func.func @transform_2(%arg0: i32) -> (i32, i32) {
    %c0_i32 = arith.constant 0 : i32
    %c0_i32_0 = arith.constant 0 : i32
    %c0_i32_1 = arith.constant 0 : i32
    return %c0_i32, %c0_i32_0 : i32, i32
  }
  func.func @transform_3(%arg0: i32) -> (i32, i32) {
    %c0_i32 = arith.constant 0 : i32
    %c0_i32_0 = arith.constant 0 : i32
    %c0_i32_1 = arith.constant 0 : i32
    return %c0_i32, %c0_i32_0 : i32, i32
  }
  func.func @transform_4(%arg0: i32) -> (i32, i32) {
    %c0_i32 = arith.constant 0 : i32
    %c0_i32_0 = arith.constant 0 : i32
    %c0_i32_1 = arith.constant 0 : i32
    return %c0_i32, %c0_i32_0 : i32, i32
  }
  func.func @transform_5(%arg0: i32) -> (i32, i32, i32) {
    %c0_i32 = arith.constant 0 : i32
    %c0_i32_0 = arith.constant 0 : i32
    %c0_i32_1 = arith.constant 0 : i32
    return %arg0, %c0_i32, %c0_i32_0 : i32, i32, i32
  }
}

</mosaic_0001>

<bundles_post_ra>
// kernel: tpu_custom_call.1
= control target key start
LH: loop header
LB: loop body
LE: loop exit
PB: predicated region body
PF: predicated region fallthrough
CT: control target
= control target key end

     0   :  { %10 = vsyncpa [#allocation3], 0  ;;  %s922_s0 = inlined_call_operand.hbm [shape: f32[2,4,256], index: 0, kind: input, shape index: {}]   ;;  %s923_s1 = inlined_call_operand.vmem [shape: f32[2,4], index: 1, kind: input, shape index: {}]   ;;  %s924_s2 = inlined_call_operand.vmem [shape: f32[2,1], index: 2, kind: input, shape index: {}]   ;;  %s925_s3 = inlined_call_operand.vmem [shape: f32[4,2], index: 3, kind: input, shape index: {}]   ;;  %s926_s4 = inlined_call_operand.vmem [shape: f32[4,1], index: 4, kind: input, shape index: {}]   ;;  %s927_s5 = inlined_call_operand.hbm [shape: f32[2,4,256], index: 5, kind: output, shape index: {}]  }
   0x1   :  { %12 = vsyncpa [#allocation3 + $0x1], 0 }
   0x2   :  { %13 = vsyncpa [#allocation4], 0 }
   0x3   :  { %15 = vsyncpa [#allocation4 + $0x1], 0  ;;  %s742_s18 = smov 0   ;;  %s744_s19 = smov 0  }
   0x4   :  { %s746_s20 = smov 0   ;;  %s748_s21 = smov 0  }
   0x5 LB: > { %s763_s22 = sadd.s32 4294967295, %s704_s21   ;;  %s517_s23 = sadd.s32 4294967294, %s704_s21   ;;  %s704_s21 = sphi %s748_s21, %s942_s21   ;;  %s700_s20 = sphi %s746_s20, %s941_s20   ;;  %s696_s19 = sphi %s744_s19, %s940_s19   ;;  %s692_s18 = sphi %s742_s18, %s939_s18  }
   0x6   : > { %s767_s24 = sadd.s32 1, %s704_s21   ;;  %s28_s25 = sadd.s32 1, %s700_s20 }
   0x7   : > { %s25_s26 = ssub.s32 %s704_s21, %s767_s24  ;;  %p35_p0 = scmp.ne.s32.totalorder %s700_s20, %s696_s19 }
   0x8   : > { %p26_p1 = scmp.eq.s32.totalorder %s25_s26, 0  ;;  %p36_p2 = scmp.eq.s32.totalorder %s704_s21, 0 }
   0x9   : > { %p41_p3 = scmp.ne.s32.totalorder %s696_s19, %s692_s18  ;;  %p42_p4 = scmp.eq.s32.totalorder %s763_s22, 0 }
   0xa   : > { %s779_s27 = scalar_select %p26_p1, %s700_s20, %s28_s25  }
   0xb   : > { %p781_p5 = por %p36_p2, %p35_p0  ;;  %p785_p6 = por %p42_p4, %p41_p3 }
   0xc   : > { %p149_p7 = scmp.eq.s32.totalorder %s763_s22, 1  ;;  %p155_p8 = scmp.eq.s32.totalorder %s517_s23, 1 }
   0xd   : > { %p564_p10 = scmp.lt.s32.totalorder %s704_s21, 2  ;;  %s187_s7 = sand.u32 1, %s700_s20  }
   0xe   : > { %p792_p11 = por %p149_p7, %p35_p0  ;;  %p796_p12 = por %p155_p8, %p41_p3 }
   0xf   : > { %s536_s8 = sshll.u32 %s704_s21, 7  ;;  %s520_s9 = sshll.u32 %s187_s7, 3 }
  0x10   : > { %s931_s30 = scalar_select %p792_p11, 1, 0 }
  0x11   : > { %s932_s6 = scalar_select %p796_p12, 1, 0 }
  0x12   : > { %s805_s12 = scalar_lea.hbm %s922_s0, %s536_s8  ;;  %s191_s13 = scalar_lea.vmem [#allocation2], %s520_s9 }
  0x13   : > { %s199_s14 = sshll.u32 %s191_s13, 4  ;;  %p809_p13 = pnand %p564_p10, %p781_p5  ;;  %s813_s14 = int_to_ptr.vmem [resolvable:$true] %s199_s14 }
  0x14   : > { %s188_s16 = scalar_lea.sflag [#allocation3], %s187_s7  ;;  %s608_s17 = scalar_lea.hbm %s805_s12, 128 }
  0x15   : > { %p609_p2 = scmp.ne.s32.totalorder %s805_s12, %s608_s17  ;;  %p610_p3 = pneg %p809_p13 }
  0x16   : > { %s613_s26 = scalar_lea.hbm %s922_s0, 256  ;;  %p614_p5 = scmp.lt.u32.totalorder %s805_s12, %s922_s0 }
  0x17   : > { %p611_p4 = pnand %p610_p3, %p609_p2  ;;  %p615_p8 = scmp.lt.u32.totalorder %s613_s26, %s608_s17 }
  0x18   : > { %p617_p9 = scmp.lt.u32.totalorder %s608_s17, %s805_s12 }
  0x19   : > { %p612_p7 = pneg %p611_p4  ;;  %p616_p10 = por %p615_p8, %p614_p5 }
  0x1b   : > { %p618_p0 = por %p617_p9, %p616_p10 }
  0x1d   : > { %p619_p1 = pnand %p618_p0, %p612_p7 }
  0x1f   : > { %622 = shalt.err (!%p619_p1)
}
  0x20   : > { %s623_s7 = scalar_lea.vmem %s813_s14, 128  ;;  %s706_s9 = smov [#allocation2]  }
  0x21   : > { %p624_p2 = scmp.ne.s32.totalorder %s813_s14, %s623_s7  ;;  %s628_s10 = sshll.u32 %s706_s9, 4  ;;  %s629_s10 = int_to_ptr.vmem [resolvable:$false] %s628_s10 }
  0x22   : > { %s630_s11 = scalar_lea.vmem %s629_s10, 256  ;;  %p631_p11 = scmp.lt.s32.totalorder %s813_s14, %s629_s10 }
  0x23   : > { %p626_p4 = pnand %p624_p2, %p610_p3  ;;  %p632_p5 = scmp.lt.s32.totalorder %s630_s11, %s623_s7 }
  0x25   : > { %p627_p12 = pneg %p626_p4  ;;  %p633_p8 = por %p632_p5, %p631_p11 }
  0x27   : > { %p634_p9 = pnand %p633_p8, %p627_p12 }
  0x29   : > { %637 = shalt.err (!%p634_p9)
}
  0x2a   : > { %559 = dma.hbm_to_vmem [thread:$0]  (!%p809_p13), %s805_s12, 128, %s813_s14, %s188_s16  }
  0x2b   : > { %p934_p0 = scmp.lt.s32.totalorder %s704_s21, 3  ;;  %p935_p1 = scmp.ge.s32.totalorder %s704_s21, 1 }
  0x2d   : > { %p205_p3 = pnand %p935_p1, %p934_p0 }
  0x2e   : > { %s847_s13 = sand.u32 (!%p205_p3), 1, %s696_s19  }
  0x2f   : > { %208 = sbr.rel (%p205_p3) target bundleno = 809 (0x329), region = 40  ;;  %s524_s17 = sshll.u32 (!%p205_p3), %s847_s13, 3 }
  0x30   : > { %s211_s23 = scalar_lea.sflag (!%p205_p3), [#allocation3], %s847_s13  ;;  %s214_s15 = scalar_lea.vmem (!%p205_p3), [#allocation2], %s524_s17 }
  0x36   : > { %683 = dma.done.wait (%p785_p6), %s211_s23, 128  }
  0x37   : > { %685 = vsyncadd (%p785_p6), %s211_s23, 4294967168  ;;  %vm245_vm0 = vcmask 1043456   ;;  %v241_v0 = vld [vmem:[%s214_s15] sm:$0xff]  ;;  %v707_v5 = vmov 0.0   ;;  %vm708_vm1 = vmmov 0   ;;  %vm254_vm2 = vcmask 31744  }
  0x38   : > { %v243_v1 = vcombine.high %v241_v0, %v241_v0  ;;  %v246_v2 = vsel %vm245_vm0, %v241_v0, 0.0  ;;  %542 = vmatprep.subr.mxu0 %v707_v5  ;;  %547 = vmatprep.subr.mxu1 %v707_v5  ;;  %v252_v8 = vld [vmem:[%s923_s1] sm:$0x3]  ;;  %vm338_vm3 = vcmask 1041408   ;;  %vm334_vm4 = vcmask 15360   ;;  %s537_s7 = sshll.u32 %s763_s22, 7 }
  0x39   : > { %544 = vmatprep.mubr.msk.f32.mxu0 %vm708_vm1, %v707_v5  ;;  %549 = vmatprep.mubr.msk.f32.mxu1 %vm708_vm1, %v707_v5  ;;  %v253_v9 = vld [vmem:[%s924_s2] sm:$0x3]  ;;  %v709_v15 = vmov 0   ;;  %v710_v24 = vmov 839922192   ;;  %v425_v26 = vlaneseq  ;;  %s240_s9 = scalar_lea.vmem [#allocation5], %s524_s17  ;;  %s878_s15 = scalar_lea.hbm %s927_s5, %s537_s7 }
  0x3a   : > { %v247_v3 = vsel %vm245_vm0, %v243_v1, 0.0  ;;  %v332_v14 = vld [vmem:[%s925_s3] sm:$0xf]  ;;  %602 = vset.pattern.permute.xlu0 %v709_v15  ;;  %v423_v25 = vunpack.c.l.s4 %v710_v24  ;;  %s447_s10 = sshll.u32 %s240_s9, 4  ;;  %s433_s12 = scalar_lea.sflag [#allocation4], %s847_s13  ;;  %s880_s10 = int_to_ptr.vmem [resolvable:$true] %s447_s10 }
  0x3b   : > { %v248_v4 = vadd.f32 %v247_v3, %v246_v2  ;;  %v333_v16 = vld [vmem:[%s926_s4] sm:$0xf]  ;;  %v426_v28 = vshrl.u32 %v425_v26, 7  ;;  %s638_s29 = scalar_lea.vmem %s880_s10, 128  ;;  %p936_p11 = scmp.ne.s32.totalorder %s931_s30, 0 }
  0x3c   : > { %v424_v27 = vunpack.c.0.s8 %v423_v25  ;;  %p639_p6 = scmp.ne.s32.totalorder %s880_s10, %s638_s29  ;;  %s711_s22 = smov [#allocation5]  }
  0x3d   : > { %249 = vadd.xlane.f32.xlu0 %v248_v4  ;;  %s642_s17 = sshll.u32 %s711_s22, 4  ;;  %s643_s17 = int_to_ptr.vmem [resolvable:$false] %s642_s17 }
  0x3e   : > { %v427_v29 = vsub.s32 %v424_v27, %v426_v28  ;;  %p640_p12 = pnand %p639_p6, %p936_p11  ;;  %s644_s14 = scalar_lea.vmem %s643_s17, 256 }
  0x3f   : > { %p645_p7 = scmp.lt.s32.totalorder %s880_s10, %s643_s17  ;;  %p646_p10 = scmp.lt.s32.totalorder %s644_s14, %s638_s29 }
  0x40   : > { %p641_p13 = pneg %p640_p12 }
  0x41   : > { %p647_p2 = por %p646_p10, %p645_p7 }
  0x43   : > { %p648_p4 = pnand %p647_p2, %p641_p13 }
  0xca   : > { %v250_v6 = vpop.xlane.xlu0 %249 }
  0xcb   : > { %v251_v7 = vmul.f32 0.00390625, %v250_v6 }
  0xcd   : > { %543 = vmatpush3.msk.msra.mxu0 %vm245_vm0, %v251_v7 }
  0xce   : > { %545 = vmatmul.mubr.msk.f32.vlgmr.msra.gmra.mrb[0].mxu0 %vm254_vm2, %v252_v8 }
 0x1a1   : > { %v327_v10 = vpop.f32.mrb[0].mxu0 }
 0x1a2   : > { %v328_v11 = vadd.f32 %v327_v10, %v253_v9  ;;  %v546_v12 = vpop.f32.mrb[1].mxu0 }
 0x1a4   : > { %v331_v13 = vmax.f32 %v328_v11, 0.0 }
 0x1a6   : > { %548 = vmatpush3.msk.msra.mxu1 %vm338_vm3, %v331_v13 }
 0x1a7   : > { %550 = vmatmul.mubr.msk.f32.vlgmr.msra.gmra.mrb[0].mxu1 %vm334_vm4, %v332_v14 }
 0x27a   : > { %v408_v17 = vpop.f32.mrb[0].mxu1 }
 0x27b   : > { %v409_v18 = vadd.f32 %v408_v17, %v333_v16  ;;  %v551_v19 = vpop.f32.mrb[1].mxu1 }
 0x27d   : > { %v530_v20 = vmul.f32 -1.442695, %v409_v18 }
 0x27f   : > { %604 = vpow2.f32 %v530_v20 }
 0x289   : > { %v605_v21 = vpop.eup %604 }
 0x28a   : > { %v415_v22 = vadd.f32 1.0, %v605_v21 }
 0x28c   : > { %606 = vrcp.f32 %v415_v22 }
 0x296   : > { %v607_v23 = vpop.eup %606 }
 0x297   : > { %420 = vperm.xlu0 %602, %v607_v23  }
 0x316   : > { %v421_v30 = vpop.permute.xlu0 %420 }
 0x317   : > { %v428_v31 = vrot.slane %v421_v30, %v427_v29 }
 0x319   : > { %v430_v32 = vmul.f32 %v428_v31, %v241_v0 }
 0x31b   : > { %431 = vst [vmem:[%s240_s9] sm:$0xff] %v430_v32 }
 0x31c   : > { %651 = shalt.err (!%p648_p4)
}
 0x31d   : > { %s652_s13 = scalar_lea.hbm %s878_s15, 128  ;;  %s656_s26 = scalar_lea.hbm %s927_s5, 256 }
 0x31e   : > { %p653_p5 = scmp.ne.s32.totalorder %s878_s15, %s652_s13  ;;  %p657_p0 = scmp.lt.u32.totalorder %s878_s15, %s927_s5 }
 0x31f   : > { %p658_p1 = scmp.lt.u32.totalorder %s656_s26, %s652_s13  ;;  %p660_p6 = scmp.lt.u32.totalorder %s652_s13, %s878_s15 }
 0x320   : > { %p654_p8 = pnand %p653_p5, %p936_p11 }
 0x321   : > { %p659_p3 = por %p658_p1, %p657_p0 }
 0x322   : > { %p655_p9 = pneg %p654_p8 }
 0x323   : > { %p661_p12 = por %p660_p6, %p659_p3 }
 0x325   : > { %p662_p13 = pnand %p661_p12, %p655_p9 }
 0x327   : > { %665 = shalt.err (!%p662_p13)
}
 0x328   : > { %554 = dma.vmem_to_hbm [thread:$0]  (%p936_p11), %s880_s10, 128, %s878_s15, %s433_s12  }
 0x329 PF: > { %s459_s7 = sand.u32 1, %s692_s18   ;;  %p937_p7 = scmp.ne.s32.totalorder %s932_s6, 0 }
 0x32a   : > { %p938_p10 = scmp.ge.s32.totalorder %s704_s21, 2  ;;  %s460_s9 = scalar_lea.sflag [#allocation4], %s459_s7 }
 0x32c   : > { %p561_p2 = pnand %p938_p10, %p937_p7 }
 0x32e   : > { %687 = dma.done.wait (!%p561_p2), %s460_s9, 128  }
 0x32f   : > { %689 = vsyncadd (!%p561_p2), %s460_s9, 4294967168  ;;  %p18_p4 = scmp.ge.s32.totalorder %s767_s24, 4   ;;  %s939_s18 = smov %s696_s19 }
 0x330   : > { %s940_s19 = smov %s700_s20  ;;  %s941_s20 = smov %s779_s27 }
 0x331   : > { %s942_s21 = smov %s767_s24  ;;  %20 = sbr.rel (!%p18_p4) target bundleno = 5 (0x5), region = 85 }
 0x338   :  { %465 = vsyncpa [#allocation3], 1 }
 0x339   :  { %467 = vsyncpa [#allocation3 + $0x1], 1 }
 0x33a   :  { %468 = vsyncpa [#allocation4], 1 }
 0x33b   :  { %470 = vsyncpa [#allocation4 + $0x1], 1 }

</bundles_post_ra>
